<compile_context>
chip_gen: v5e
topology: v5e:2x2
jax: 0.10.0
libtpu: 0.0.40
codegen_flags: <defaults>
</compile_context>

<pallas_src>
import functools
import math

import jax
import jax.numpy as jnp
from jax import lax
from jax.experimental import pallas as pl
from jax.experimental.pallas import tpu as pltpu

_A = 0.7978845608028654          # sqrt(2/pi)
_B = _A * 0.044715               # sqrt(2/pi) * 0.044715


def _conv_gelu_pool_kernel(p_ref, w_ref, o_ref, *, n_batch, n_pos):
    # p_ref: (Kd+1, B*P)  im2col patches + ones row (lane axis = batch*spatial)
    # w_ref: (Cout, Kd+1) flattened conv weight with bias as last column
    # o_ref: (B, Cout)    pooled output in its final layout
    acc = jnp.dot(w_ref[...], p_ref[...],
                  preferred_element_type=jnp.float32)         # (Cout, B*P) MXU

    # tanh-approximation GELU (matches the reference CUDA kernel)
    x2 = acc * acc
    t = jnp.tanh(acc * (_A + _B * x2))                        # tanh on EUP
    half = 0.5 * acc
    g = half + half * t                                       # (Cout, B*P)

    # Per-batch averaging matrix built in-register (no HBM operand),
    # lane-dense: pool_t[b, p] = 1/P if p in [b*P, (b+1)*P) else 0.
    bp = n_batch * n_pos
    b_idx = lax.broadcasted_iota(jnp.int32, (n_batch, bp), 0)
    p_idx = lax.broadcasted_iota(jnp.int32, (n_batch, bp), 1)
    start = b_idx * n_pos
    pool_t = jnp.where((p_idx >= start) & (p_idx < start + n_pos),
                       jnp.float32(1.0 / n_pos), jnp.float32(0.0))

    # Global average pool: contract the B*P lane axis of both operands.
    # out[b, c] = sum_p pool_t[b, p] * g[c, p]  -> (B, Cout), tiny MXU matmul
    o_ref[...] = lax.dot_general(pool_t, g, (((1,), (1,)), ((), ())),
                                 preferred_element_type=jnp.float32)


def prepare_params(weight, bias):
    """One-time weight prep (keep this off the per-call critical path).

    Returns (Cout, Cin*K*K + 1): flattened conv weight (tap-major,
    cin-minor) with the bias appended as the last column."""
    Cout, Cin, K, _ = weight.shape
    w_mat = jnp.transpose(weight, (0, 2, 3, 1)).reshape(Cout, Cin * K * K)
    return jnp.concatenate(
        [w_mat, bias.reshape(Cout, 1)], axis=1).astype(jnp.float32)


@jax.jit
def conv_gelu_pool(x, w_aug):
    """x: (B, Cin, H, W) f32; w_aug: (Cout, Cin*K*K + 1) -> (B, Cout)."""
    B, Cin, H, W = x.shape
    Cout, Kd1 = w_aug.shape
    K = math.isqrt((Kd1 - 1) // Cin)
    Ho, Wo = H - K + 1, W - K + 1
    P = Ho * Wo
    Kd = Cin * K * K

    x = x.astype(jnp.float32)

    # im2col in the flipped, lane-dense layout (Kd, B*P):
    # row = (i*K + j)*Cin + c, col = b*P + ho*Wo + wo — matches w_aug order.
    xt = jnp.transpose(x, (1, 0, 2, 3))                        # (Cin, B, H, W)
    slabs = [xt[:, :, i:i + Ho, j:j + Wo]
             for i in range(K) for j in range(K)]
    patches = jnp.concatenate(slabs, axis=0).reshape(Kd, B * P)
    patches_aug = jnp.concatenate(
        [patches, jnp.ones((1, B * P), jnp.float32)], axis=0)  # (Kd+1, B*P)

    cost = pl.CostEstimate(
        flops=2 * Cout * Kd1 * B * P + 2 * B * Cout * B * P + 10 * Cout * B * P,
        transcendentals=Cout * B * P,
        bytes_accessed=4 * (Kd1 * B * P + Cout * Kd1 + B * Cout),
    )

    kernel = functools.partial(_conv_gelu_pool_kernel, n_batch=B, n_pos=P)
    return pl.pallas_call(
        kernel,
        out_shape=jax.ShapeDtypeStruct((B, Cout), jnp.float32),
        compiler_params=pltpu.CompilerParams(
            allow_input_fusion=[True, False]),
        cost_estimate=cost,
    )(patches_aug, w_aug)                                       # (B, Cout)


def _reference(x, weight, bias):
    # pure-JAX reference: conv (valid) + tanh-GELU + global avg pool
    y = lax.conv_general_dilated(
        x, weight, window_strides=(1, 1), padding="VALID",
        dimension_numbers=("NCHW", "OIHW", "NCHW"))
    y = y + bias.reshape(1, -1, 1, 1)
    c = jnp.sqrt(2.0 / jnp.pi)
    y = 0.5 * y * (1.0 + jnp.tanh(c * (y + 0.044715 * y ** 3)))
    return jnp.mean(y, axis=(2, 3))


if __name__ == "__main__":
    key = jax.random.PRNGKey(0)
    k_x, k_w, k_b = jax.random.split(key, 3)

    batch, in_channels, out_channels, kernel_size, spatial = 2, 4, 16, 3, 16

    x = jax.random.normal(
        k_x, (batch, in_channels, spatial, spatial), dtype=jnp.float32)
    # deterministic conv parameters (uniform, PyTorch-like fan-in scaling)
    fan_in = in_channels * kernel_size * kernel_size
    bound = 1.0 / math.sqrt(fan_in)
    weight = jax.random.uniform(
        k_w, (out_channels, in_channels, kernel_size, kernel_size),
        dtype=jnp.float32, minval=-bound, maxval=bound)
    bias = jax.random.uniform(
        k_b, (out_channels,), dtype=jnp.float32, minval=-bound, maxval=bound)

    w_aug = jax.block_until_ready(prepare_params(weight, bias))  # one-time prep

    out = jax.block_until_ready(conv_gelu_pool(x, w_aug))

    ref = _reference(x, weight, bias)
    assert out.shape == (batch, out_channels)
    assert jnp.allclose(out, ref, atol=1e-4, rtol=1e-4), "mismatch vs reference"

    print("KERNEL_OK")
</pallas_src>

<mosaic_0001>
module attributes {stable_mosaic.version = 11 : i64} {
  func.func @_conv_gelu_pool_kernel(%arg0: memref<37x392xf32, #tpu.memory_space<vmem>>, %arg1: memref<16x37xf32, #tpu.memory_space<vmem>>, %arg2: memref<2x16xf32, #tpu.memory_space<vmem>>) attributes {dimension_semantics = [], scalar_prefetch = 0 : i64, scratch_operands = 0 : i64, tpu.core_type = #tpu.core_type<tc>} {
    %c0 = arith.constant 0 : index
    %c0_0 = arith.constant 0 : index
    %0 = vector.load %arg1[%c0, %c0_0] : memref<16x37xf32, #tpu.memory_space<vmem>>, vector<16x37xf32>
    %c0_1 = arith.constant 0 : index
    %c0_2 = arith.constant 0 : index
    %1 = vector.load %arg0[%c0_1, %c0_2] : memref<37x392xf32, #tpu.memory_space<vmem>>, vector<37x392xf32>
    %cst = arith.constant dense<0.000000e+00> : vector<16x392xf32>
    %2 = tpu.matmul %0, %1, %cst {dimension_numbers = #tpu.dot_dimension_numbers<[1], [0], [0], [1], [0, 0, 1, 1], [], []>} : vector<16x37xf32>, vector<37x392xf32>, vector<16x392xf32> -> vector<16x392xf32>
    %3 = arith.mulf %2, %2 : vector<16x392xf32>
    %cst_3 = arith.constant 0.0356774069 : f32
    %4 = vector.broadcast %cst_3 : f32 to vector<16x392xf32>
    %5 = arith.mulf %4, %3 : vector<16x392xf32>
    %cst_4 = arith.constant 0.797884583 : f32
    %6 = vector.broadcast %cst_4 : f32 to vector<16x392xf32>
    %7 = arith.addf %6, %5 : vector<16x392xf32>
    %8 = arith.mulf %2, %7 : vector<16x392xf32>
    %9 = math.tanh %8 : vector<16x392xf32>
    %cst_5 = arith.constant 5.000000e-01 : f32
    %10 = vector.broadcast %cst_5 : f32 to vector<16x392xf32>
    %11 = arith.mulf %10, %2 : vector<16x392xf32>
    %12 = arith.mulf %11, %9 : vector<16x392xf32>
    %13 = arith.addf %11, %12 : vector<16x392xf32>
    %14 = tpu.iota {dimensions = array<i32: 0>} : vector<2x392xi32>
    %15 = tpu.iota {dimensions = array<i32: 1>} : vector<2x392xi32>
    %c196_i32 = arith.constant 196 : i32
    %16 = vector.broadcast %c196_i32 : i32 to vector<2x392xi32>
    %17 = arith.muli %14, %16 : vector<2x392xi32>
    %18 = arith.cmpi sge, %15, %17 : vector<2x392xi32>
    %c196_i32_6 = arith.constant 196 : i32
    %19 = vector.broadcast %c196_i32_6 : i32 to vector<2x392xi32>
    %20 = arith.addi %17, %19 : vector<2x392xi32>
    %21 = arith.cmpi slt, %15, %20 : vector<2x392xi32>
    %22 = arith.andi %18, %21 : vector<2x392xi1>
    %cst_7 = arith.constant 0.00510204071 : f32
    %cst_8 = arith.constant 0.000000e+00 : f32
    %23 = vector.broadcast %cst_7 : f32 to vector<2x392xf32>
    %24 = vector.broadcast %cst_8 : f32 to vector<2x392xf32>
    %25 = arith.select %22, %23, %24 : vector<2x392xi1>, vector<2x392xf32>
    %cst_9 = arith.constant dense<0.000000e+00> : vector<2x16xf32>
    %26 = tpu.matmul %25, %13, %cst_9 {dimension_numbers = #tpu.dot_dimension_numbers<[1], [1], [0], [0], [0, 0, 1, 0], [], []>} : vector<2x392xf32>, vector<16x392xf32>, vector<2x16xf32> -> vector<2x16xf32>
    %c0_10 = arith.constant 0 : index
    %c0_11 = arith.constant 0 : index
    %27 = vector.load %arg2[%c0_10, %c0_11] : memref<2x16xf32, #tpu.memory_space<vmem>>, vector<2x16xf32>
    tpu.vector_store %arg2[%c0_10, %c0_11], %26 {strides = array<i32>} : memref<2x16xf32, #tpu.memory_space<vmem>>, vector<2x16xf32>,
    return
  }
}

</mosaic_0001>

<bundles_post_ra>
// kernel: conv_gelu_pool.2
= control target key start
LH: loop header
LB: loop body
LE: loop exit
PB: predicated region body
PF: predicated region fallthrough
CT: control target
= control target key end

     0   :  { %s887_s0 = inlined_call_operand.vmem [shape: f32[16,37], index: 0, kind: input, shape index: {}]   ;;  %s888_s1 = inlined_call_operand.vmem [shape: f32[36,392], index: 1, kind: input, shape index: {}]   ;;  %s889_s2 = inlined_call_operand.<no memory space> [shape: f32[], index: 2, kind: input, shape index: {}]   ;;  %s890_s3 = inlined_call_operand.hbm [shape: f32[2,16], index: 3, kind: output, shape index: {}]  }
   0x1   :  { %v8_v0 = vstv %s889_s2 }
   0x2   :  { %v67_v1 = vlaneseq  ;;  %v674_v2 = vld [vmem:[%s888_s1 + $0x60] sm:$0xff]  ;;  %v675_v5 = vld [vmem:[%s888_s1 + $0x68] sm:$0xff]  ;;  %v676_v8 = vld [vmem:[%s888_s1 + $0x70] sm:$0xff] }
   0x3   :  { %v678_v6 = vld [vmem:[%s888_s1 + $0x80] sm:$0xff]  ;;  %v679_v7 = vld [vmem:[%s888_s1 + $0x88] sm:$0xff]  ;;  %v680_v10 = vld [vmem:[%s888_s1 + $0x90] sm:$0xff] }
   0x4   :  { %v774_v3 = vand.u32 127, %v67_v1  ;;  %v776_v4 = vshrl.u32 %v67_v1, 7  ;;  %v681_v12 = vld [vmem:[%s888_s1 + $0x98] sm:$0xff]  ;;  %v670_v13 = vld [vmem:[%s888_s1 + $0x40] sm:$0xff]  ;;  %v671_v14 = vld [vmem:[%s888_s1 + $0x48] sm:$0xff] }
   0x5   :  { %v672_v15 = vld [vmem:[%s888_s1 + $0x50] sm:$0xff] }
   0x6   :  { %v272_v9 = vadd.s32 32, %v776_v4  ;;  %v795_v11 = vadd.s32 384, %v774_v3 }
   0x8   :  { %vm273_vm0 = vcmp.lt.s32.totalorder %v272_v9, 36  ;;  %vm70_vm1 = vcmp.lt.s32.totalorder %v795_v11, 392 }
   0x9   :  { %v274_v16 = vsel %vm273_vm0, %v678_v6, %v8_v0  ;;  %v290_v17 = vsel %vm273_vm0, %v679_v7, %v8_v0  ;;  %v306_v18 = vsel %vm273_vm0, %v680_v10, %v8_v0  ;;  %v322_v19 = vsel %vm273_vm0, %v681_v12, %v8_v0 }
   0xa   :  { %9 = vsyncpa [#allocation8], 0  ;;  %283 = vst [vmem:[#allocation9 + $0x20] sm:$0xff] %v274_v16  ;;  %v327_v20 = vsel %vm70_vm1, %v322_v19, %v8_v0  ;;  %v677_v21 = vld [vmem:[%s888_s1 + $0x78] sm:$0xff]  ;;  %vm361_vm2 = vcmask 1044480   ;;  %v666_v25 = vld [vmem:[%s888_s1 + $0x20] sm:$0xff] }
   0xb   :  { %299 = vst [vmem:[#allocation9 + $0x48] sm:$0xff] %v290_v17  ;;  %v673_v22 = vld [vmem:[%s888_s1 + $0x58] sm:$0xff]  ;;  %v263_v23 = vsel %vm70_vm1, %v677_v21, %v8_v0  ;;  %v667_v27 = vld [vmem:[%s888_s1 + $0x28] sm:$0xff]  ;;  %v668_v29 = vld [vmem:[%s888_s1 + $0x30] sm:$0xff]  ;;  %vm354_vm3 = vcmask 302080   ;;  %vm555_vm9 = vcmask 64512  }
   0xc   :  { %315 = vst [vmem:[#allocation9 + $0x70] sm:$0xff] %v306_v18  ;;  %v199_v24 = vsel %vm70_vm1, %v673_v22, %v8_v0  ;;  %v669_v26 = vld [vmem:[%s888_s1 + $0x38] sm:$0xff]  ;;  %v14_v33 = vld [vmem:[%s888_s1] sm:$0xff]  ;;  %v663_v36 = vld [vmem:[%s888_s1 + $0x8] sm:$0xff]  ;;  %s654_s4 = sshll.u32 %s890_s3, 4  ;;  %s655_s4 = int_to_ptr.hbm [resolvable:$true] %s654_s4 }
   0xd   :  { %331 = vst [vmem:[#allocation9 + $0x90] sm:$0xff] %v327_v20  ;;  %v135_v31 = vsel %vm70_vm1, %v669_v26, %v8_v0  ;;  %v665_v34 = vld [vmem:[%s888_s1 + $0x18] sm:$0xff]  ;;  %v664_v37 = vld [vmem:[%s888_s1 + $0x10] sm:$0xff]  ;;  %v332_v39 = vld [vmem:[%s887_s0] sm:$0xff] }
   0xe   :  { %v71_v38 = vsel %vm70_vm1, %v665_v34, %v8_v0  ;;  %v333_v40 = vld [vmem:[%s887_s0 + $0x8] sm:$0xff]  ;;  %v534_v34 = vadd.s32 128, %v774_v3  ;;  %s747_s0 = smov [#allocation7]   ;;  %vm645_vm1 = vcmask 123904  }
   0xf   :  { %s652_s28 = sshll.u32 %s747_s0, 4  ;;  %s653_s28 = int_to_ptr.vmem [resolvable:$true] %s652_s28 }
  0x11   :  { %v350_v28 = vld [vmem:[#allocation9 + $0x20] sm:$0x1f] }
  0x12   :  { %682 = vmatpush.msk.msra.mxu0 %vm361_vm2, %v350_v28  ;;  %v351_v30 = vld [vmem:[#allocation9 + $0x48] sm:$0x1f] }
  0x13   :  { %685 = vmatpush.msk.msra.mxu1 %vm361_vm2, %v351_v30  ;;  %v352_v32 = vld [vmem:[#allocation9 + $0x70] sm:$0x1f] }
  0x14   :  { %688 = vmatpush.msk.msra.mxu2 %vm361_vm2, %v352_v32  ;;  %v353_v35 = vld [vmem:[#allocation9 + $0x90] sm:$0x1f]  ;;  %386 = vmatpush.msra.mxu0 %v674_v2 }
  0x15   :  { %691 = vmatpush.msk.msra.mxu3 %vm361_vm2, %v353_v35  ;;  %409 = vmatpush.msra.mxu1 %v675_v5 }
  0x16   :  { %432 = vmatpush.msra.mxu2 %v676_v8  ;;  %387 = vmatpush.msra.mxu0 %v670_v13 }
  0x17   :  { %455 = vmatpush.msra.mxu3 %v263_v23  ;;  %410 = vmatpush.msra.mxu1 %v671_v14  ;;  %v537_v23 = vmul.u32 196, %v776_v4 }
  0x18   :  { %433 = vmatpush.msra.mxu2 %v672_v15  ;;  %388 = vmatpush.msra.mxu0 %v666_v25 }
  0x19   :  { %456 = vmatpush.msra.mxu3 %v199_v24  ;;  %411 = vmatpush.msra.mxu1 %v667_v27  ;;  %vm538_vm4 = vcmp.ge.s32.totalorder %v774_v3, %v537_v23  ;;  %vm539_vm6 = vcmp.ge.s32.totalorder %v534_v34, %v537_v23  ;;  %vm541_vm10 = vcmp.ge.s32.totalorder %v795_v11, %v537_v23 }
  0x1a   :  { %434 = vmatpush.msra.mxu2 %v668_v29  ;;  %389 = vmatpush.msra.mxu0 %v14_v33  ;;  %v542_v33 = vadd.s32 196, %v537_v23 }
  0x1b   :  { %457 = vmatpush.msra.mxu3 %v135_v31  ;;  %412 = vmatpush.msra.mxu1 %v663_v36 }
  0x1c   :  { %435 = vmatpush.msra.mxu2 %v664_v37  ;;  %683 = vmatmul.msk.f32.vlgmr.msra.gmra.mxu0 %vm354_vm3, %v332_v39  ;;  %vm543_vm5 = vcmp.lt.s32.totalorder %v774_v3, %v542_v33  ;;  %vm544_vm7 = vcmp.lt.s32.totalorder %v534_v34, %v542_v33  ;;  %vm546_vm12 = vcmp.lt.s32.totalorder %v795_v11, %v542_v33 }
  0x1d   :  { %686 = vmatmul.msk.f32.vlgmr.msra.gmra.mxu1 %vm354_vm3, %v332_v39  ;;  %689 = vmatmul.msk.f32.vlgmr.msra.gmra.mxu2 %vm354_vm3, %v332_v39  ;;  %vm547_vm8 = vmand %vm538_vm4, %vm543_vm5 }
  0x1e   :  { %458 = vmatpush.msra.mxu3 %v71_v38  ;;  %vm548_vm11 = vmand %vm539_vm6, %vm544_vm7 }
  0x1f   :  { %692 = vmatmul.msk.f32.vlgmr.msra.gmra.mxu3 %vm354_vm3, %v332_v39  ;;  %vm550_vm15 = vmand %vm541_vm10, %vm546_vm12 }
  0x24   :  { %684 = vmatmul.msk.f32.gmra.mxu0 %vm354_vm3, %v333_v40 }
  0x25   :  { %687 = vmatmul.msk.f32.gmra.mxu1 %vm354_vm3, %v333_v40  ;;  %690 = vmatmul.msk.f32.gmra.mxu2 %vm354_vm3, %v333_v40 }
  0x27   :  { %693 = vmatmul.msk.f32.gmra.mxu3 %vm354_vm3, %v333_v40 }
  0x99   :  { %v391_v41 = vpop.f32.mrf.mxu0 }
  0x9a   :  { %v466_v42 = vmul.f32 %v391_v41, %v391_v41  ;;  %v414_v43 = vpop.f32.mrf.mxu1  ;;  %v506_v22 = vmul.f32 0.5, %v391_v41 }
  0x9b   :  { %v467_v44 = vmul.f32 %v414_v43, %v414_v43  ;;  %v507_v29 = vmul.f32 0.5, %v414_v43 }
  0x9c   :  { %v474_v45 = vmul.f32 0.035677407, %v466_v42 }
  0x9d   :  { %v475_v46 = vmul.f32 0.035677407, %v467_v44 }
  0x9e   :  { %v482_v48 = vadd.f32 0.7978846, %v474_v45 }
  0x9f   :  { %v483_v54 = vadd.f32 0.7978846, %v475_v46  ;;  %v535_v46 = vadd.s32 256, %v774_v3 }
  0xa0   :  { %v860_v47 = vpop.f32.mrf.mxu2  ;;  %v490_v59 = vmul.f32 %v482_v48, %v391_v41 }
  0xa1   :  { %v468_v49 = vmul.f32 %v860_v47, %v860_v47  ;;  %v394_v50 = vpop.f32.mrf.mxu0  ;;  %v491_v63 = vmul.f32 %v483_v54, %v414_v43  ;;  %v508_v40 = vmul.f32 0.5, %v860_v47  ;;  %v745_v54 = vmov 0.0051020407  }
  0xa2   :  { %v864_v51 = vpop.f32.mrf.mxu3  ;;  %v470_v52 = vmul.f32 %v394_v50, %v394_v50  ;;  %v417_v53 = vpop.f32.mrf.mxu1  ;;  %703 = vtanh.f32 %v490_v59  ;;  %v510_v20 = vmul.f32 0.5, %v394_v50  ;;  %vm540_vm13 = vcmp.ge.s32.totalorder %v535_v46, %v537_v23 }
  0xa3   :  { %v469_v55 = vmul.f32 %v864_v51, %v864_v51  ;;  %v476_v56 = vmul.f32 0.035677407, %v468_v49  ;;  %v471_v58 = vmul.f32 %v417_v53, %v417_v53  ;;  %v511_v27 = vmul.f32 0.5, %v417_v53 }
  0xa4   :  { %v478_v57 = vmul.f32 0.035677407, %v470_v52  ;;  %v509_v48 = vmul.f32 0.5, %v864_v51  ;;  %vm545_vm14 = vcmp.lt.s32.totalorder %v535_v46, %v542_v33 }
  0xa5   :  { %v477_v60 = vmul.f32 0.035677407, %v469_v55  ;;  %v479_v62 = vmul.f32 0.035677407, %v471_v58  ;;  %v484_v0 = vadd.f32 0.7978846, %v476_v56  ;;  %vm549_vm0 = vmand %vm540_vm13, %vm545_vm14 }
  0xa6   :  { %v486_v61 = vadd.f32 0.7978846, %v478_v57  ;;  %v746_v55 = vmov 0.0  }
  0xa7   :  { %v487_v2 = vadd.f32 0.7978846, %v479_v62  ;;  %v485_v7 = vadd.f32 0.7978846, %v477_v60  ;;  %v492_v13 = vmul.f32 %v484_v0, %v860_v47  ;;  %v554_v56 = vsel %vm550_vm15, 0.0051020407, %v746_v55 }
  0xa8   :  { %v494_v1 = vmul.f32 %v486_v61, %v394_v50  ;;  %v440_v5 = vpop.f32.mrf.mxu2  ;;  %v704_v17 = vpop.eup %703 }
  0xa9   :  { %v472_v6 = vmul.f32 %v440_v5, %v440_v5  ;;  %v495_v8 = vmul.f32 %v487_v2, %v417_v53  ;;  %v493_v16 = vmul.f32 %v485_v7, %v864_v51  ;;  %v514_v32 = vmul.f32 %v704_v17, %v506_v22 }
  0xaa   :  { %705 = vtanh.f32 %v494_v1  ;;  %v463_v9 = vpop.f32.mrf.mxu3  ;;  %v512_v4 = vmul.f32 0.5, %v440_v5 }
  0xab   :  { %707 = vtanh.f32 %v491_v63  ;;  %v480_v10 = vmul.f32 0.035677407, %v472_v6  ;;  %v473_v12 = vmul.f32 %v463_v9, %v463_v9  ;;  %v522_v39 = vadd.f32 %v514_v32, %v506_v22 }
  0xac   :  { %709 = vtanh.f32 %v495_v8  ;;  %v513_v42 = vmul.f32 0.5, %v463_v9 }
  0xad   :  { %v488_v14 = vadd.f32 0.7978846, %v480_v10  ;;  %v481_v15 = vmul.f32 0.035677407, %v473_v12  ;;  %711 = vtanh.f32 %v492_v13 }
  0xaf   :  { %v496_v18 = vmul.f32 %v488_v14, %v440_v5  ;;  %v489_v19 = vadd.f32 0.7978846, %v481_v15 }
  0xb0   :  { %v706_v21 = vpop.eup %705 }
  0xb1   :  { %v708_v24 = vpop.eup %707  ;;  %713 = vtanh.f32 %v496_v18  ;;  %v497_v25 = vmul.f32 %v489_v19, %v463_v9  ;;  %v518_v26 = vmul.f32 %v706_v21, %v510_v20 }
  0xb2   :  { %v710_v28 = vpop.eup %709  ;;  %715 = vtanh.f32 %v493_v16  ;;  %v515_v36 = vmul.f32 %v708_v24, %v507_v29 }
  0xb3   :  { %717 = vtanh.f32 %v497_v25  ;;  %v526_v30 = vadd.f32 %v518_v26, %v510_v20  ;;  %v519_v31 = vmul.f32 %v710_v28, %v511_v27  ;;  %v712_v37 = vpop.eup %711 }
  0xb4   :  { %v523_v45 = vadd.f32 %v515_v36, %v507_v29  ;;  %v516_v52 = vmul.f32 %v712_v37, %v508_v40 }
  0xb5   :  { %579 = vmatpush.xpose.msrb.mxu0 %v526_v30  ;;  %v527_v35 = vadd.f32 %v519_v31, %v511_v27 }
  0xb6   :  { %v524_v3 = vadd.f32 %v516_v52, %v508_v40 }
  0xb7   :  { %v714_v38 = vpop.eup %713  ;;  %599 = vmatpush.xpose.msrb.mxu1 %v527_v35 }
  0xb8   :  { %v716_v41 = vpop.eup %715  ;;  %v520_v43 = vmul.f32 %v714_v38, %v512_v4 }
  0xb9   :  { %v718_v44 = vpop.eup %717  ;;  %580 = vmatpush.xpose.msrb.mxu0 %v522_v39  ;;  %v517_v47 = vmul.f32 %v716_v41, %v509_v48 }
  0xba   :  { %v521_v49 = vmul.f32 %v718_v44, %v513_v42  ;;  %v528_v50 = vadd.f32 %v520_v43, %v512_v4 }
  0xbb   :  { %600 = vmatpush.xpose.msrb.mxu1 %v523_v45  ;;  %v525_v51 = vadd.f32 %v517_v47, %v509_v48 }
  0xbc   :  { %619 = vmatpush.xpose.msrb.mxu2 %v528_v50  ;;  %v529_v53 = vadd.f32 %v521_v49, %v513_v42  ;;  %694 = vmatmul.msk.f32.vlgmr.msrb.gmra.mxu0 %vm547_vm8, %v745_v54 }
  0xbe   :  { %697 = vmatpush.xpose.msk.msrb.mxu3 %vm555_vm9, %v529_v53  ;;  %695 = vmatmul.msk.f32.vlgmr.msrb.gmra.mxu1 %vm548_vm11, %v745_v54 }
  0xc0   :  { %620 = vmatpush.xpose.msrb.mxu2 %v524_v3 }
  0xc2   :  { %698 = vmatpush.xpose.msk.msrb.mxu3 %vm555_vm9, %v525_v51 }
  0xc3   :  { %696 = vmatmul.msk.f32.vlgmr.msrb.gmra.mxu2 %vm549_vm0, %v745_v54 }
  0xc5   :  { %699 = vmatmul.msk.f32.vlgmr.msrb.gmra.mxu3 %vm555_vm9, %v554_v56 }
 0x139   :  { %v582_v11 = vpop.f32.mrf.mxu0 }
 0x13b   :  { %v602_v57 = vpop.f32.mrf.mxu1 }
 0x13c   :  { %v603_v58 = vadd.f32 %v602_v57, %v582_v11 }
 0x146   :  { %v622_v59 = vpop.f32.mrf.mxu2 }
 0x147   :  { %v623_v60 = vadd.f32 %v622_v59, %v603_v58 }
 0x148   :  { %v642_v61 = vpop.f32.mrf.mxu3 }
 0x149   :  { %v643_v62 = vadd.f32 %v642_v61, %v623_v60 }
 0x14b   :  { %646 = vst.msk [vmem:[#allocation7] sm:$0x3] %vm645_vm1, %v643_v62 }
 0x14c   :  { %657 = dma.vmem_to_hbm [thread:$0]  %s653_s28, 32, %s655_s4, [#allocation8]  }
 0x14d   :  { %743 = dma.done.wait [#allocation8], 32  }
 0x14e   :  { %744 = vsyncadd [#allocation8], 4294967264 }
 0x14f   :  { %662 = vsyncpa [#allocation8], 1 }

</bundles_post_ra>
